<compile_context>
chip_gen: v7x
topology: tpu7x:2x2x1
jax: 0.10.0
libtpu: 0.0.40
codegen_flags: <defaults>
</compile_context>

<pallas_src>
import functools
import math

import jax
import jax.numpy as jnp
from jax.experimental import pallas as pl
from jax.experimental.pallas import tpu as pltpu


def _burst_kernel(x_ref, w1_ref, b1_ref, w2_ref, b2_ref,
                  prob_ref, mask_ref, *, logit_threshold):
    """One (tr, Wd) lane-dense row tile.

    x_ref:  (tr, Wd)       packed rows, Wd = pack*D (multiple of 128)
    w1_ref: (Wd, pack*H)   blockdiag(pack x W1^T)   (grid-invariant resident)
    b1_ref: (1, pack*H)
    w2_ref: (pack*H, Wd)   blockdiag(pack x W2^T)   (grid-invariant resident)
    b2_ref: (1, Wd)
    """
    x = x_ref[...]
    # Linear 1 + ReLU  (MXU matmul, f32 accumulate; VPU max)
    h = jnp.dot(x, w1_ref[...], preferred_element_type=jnp.float32) + b1_ref[...]
    h = jnp.maximum(h, 0.0)
    # Linear 2 -> lane-dense logits (tr, Wd); no relayout needed before store.
    logits = (jnp.dot(h, w2_ref[...], preferred_element_type=jnp.float32)
              + b2_ref[...])
    prob_ref[...] = jax.nn.sigmoid(logits).astype(prob_ref.dtype)        # EUP
    # sigmoid is monotone: prob > t  <=>  logits > log(t/(1-t)).  Comparing in
    # logit space is exact and independent of transcendental rounding.
    mask_ref[...] = (logits > logit_threshold).astype(mask_ref.dtype)    # VPU


def _round_up(x, m):
    return ((x + m - 1) // m) * m


def _tpu_generation():
    kind = ""
    try:
        kind = jax.devices()[0].device_kind.lower()
    except Exception:
        pass
    if "v7" in kind or "tpu7" in kind:
        return "v7x"
    if "v6" in kind:
        return "v6e"
    if "v5 lite" in kind or "v5e" in kind or "v5litepod" in kind:
        return "v5e"
    return "other"


# (target packed-row tile, TensorCores per chip, VMEM budget for the
#  double-buffered row blocks).  Scoped-VMEM defaults: 16 MiB v5e, 32 v6e/v7x.
_GEN_CFG = {
    "v7x":   (4096, 2, 28 << 20),
    "v6e":   (2048, 1, 28 << 20),
    "v5e":   (2048, 1, 12 << 20),
    "other": (2048, 1, 12 << 20),
}


def _pick_row_tile(nr, bytes_per_packed_row, gen):
    """Row tile (in packed rows) for the (nr, Wd) lane-dense slab."""
    target, num_tc, budget = _GEN_CFG.get(gen, _GEN_CFG["other"])
    if nr < 8:
        return nr                                      # single full-array block
    cap = max(8, budget // (2 * bytes_per_packed_row))  # double-buffered blocks
    tr = max(8, (min(target, cap) // 8) * 8)
    if num_tc == 2 and nr >= 16:
        # v7x only: >= 2 (and an even number of) steps so the two TensorCores
        # stay busy and balanced under dimension_semantics=("parallel",).
        steps = max(2, pl.cdiv(nr, tr))
        steps += steps % 2
        tr = max(8, _round_up(pl.cdiv(nr, steps), 8))
    return min(tr, _round_up(nr, 8))


def burst_detector(x, w1, b1, w2, b2, threshold=0.6, *, block_rows=None,
                   prob_dtype=jnp.float32, mask_dtype=jnp.float32):
    """x: [B, T, D] float32.
    w1: [D//2, D], b1: [D//2], w2: [D, D//2], b2: [D]
    (PyTorch nn.Linear layout: [out_features, in_features]).

    Returns (burst_prob, burst_mask), each [B, T, D].  Dtypes default to
    float32 (module semantics); pass prob_dtype=jnp.bfloat16 /
    mask_dtype=jnp.int8 to cut the dominant output HBM traffic when downstream
    consumers allow it.  block_rows is an optional row tile in packed rows of
    width lcm(D, 128)."""
    B, T, D = x.shape
    H = w1.shape[0]
    assert w1.shape == (H, D) and w2.shape == (D, H)
    assert b1.shape == (H,) and b2.shape == (D,)
    N = B * T

    # Lane-dense packing: `pack` original rows per packed row of width Wd.
    # TODO(synk): for very large input_dim the block-diagonal weight replication
    # gets wasteful; fall back to plain (tm, D) blocks in that regime.
    pack = math.lcm(D, 128) // D
    Wd = pack * D
    Npk = _round_up(N, pack)
    Nr = Npk // pack

    x2 = x.reshape(N, D)
    if Npk != N:                       # <= pack-1 extra rows, dropped on return
        x2 = jnp.pad(x2, ((0, Npk - N), (0, 0)))
    xp = x2.reshape(Nr, Wd)            # free row-major reshape

    # Fold the packing into the matmuls: block-diagonal weights, tiled biases.
    eye = jnp.eye(pack, dtype=w1.dtype)
    w1bd = jnp.kron(eye, w1.T)                         # (Wd, pack*H)
    w2bd = jnp.kron(eye, w2.T)                         # (pack*H, Wd)
    b1bd = jnp.tile(b1, pack).reshape(1, pack * H)
    b2bd = jnp.tile(b2, pack).reshape(1, Wd)

    gen = _tpu_generation()
    row_bytes = Wd * (x2.dtype.itemsize + jnp.dtype(prob_dtype).itemsize
                      + jnp.dtype(mask_dtype).itemsize)
    if block_rows is None:
        tr = _pick_row_tile(Nr, row_bytes, gen)
    else:
        tr = Nr if Nr < 8 else max(8, min(_round_up(block_rows, 8),
                                          _round_up(Nr, 8)))
    grid = pl.cdiv(Nr, tr)

    # Explicit VMEM limit from the actual working set (+~25% headroom), clamped
    # to a range safe on v5e/v6e (128 MiB physical) and v7x (64 MiB physical).
    weights_bytes = 2 * 4 * (w1bd.size + w2bd.size + b1bd.size + b2bd.size)
    ws = 2 * tr * row_bytes + weights_bytes
    vmem_limit = int(min(48 << 20, max(32 << 20, ws * 5 // 4 + (2 << 20))))

    t = min(max(float(threshold), 1e-7), 1.0 - 1e-7)
    logit_threshold = math.log(t / (1.0 - t))
    kernel = functools.partial(_burst_kernel, logit_threshold=logit_threshold)

    prob_p, mask_p = pl.pallas_call(
        kernel,
        out_shape=(
            jax.ShapeDtypeStruct((Nr, Wd), prob_dtype),
            jax.ShapeDtypeStruct((Nr, Wd), mask_dtype),
        ),
        grid_spec=pltpu.PrefetchScalarGridSpec(
            num_scalar_prefetch=0,
            grid=(grid,),
            in_specs=[
                pl.BlockSpec((tr, Wd), lambda i: (i, 0)),        # x (lane dense)
                pl.BlockSpec((Wd, pack * H), lambda i: (0, 0)),  # W1 blockdiag
                pl.BlockSpec((1, pack * H), lambda i: (0, 0)),   # b1 tiled
                pl.BlockSpec((pack * H, Wd), lambda i: (0, 0)),  # W2 blockdiag
                pl.BlockSpec((1, Wd), lambda i: (0, 0)),         # b2 tiled
            ],
            out_specs=[
                pl.BlockSpec((tr, Wd), lambda i: (i, 0)),        # burst_prob
                pl.BlockSpec((tr, Wd), lambda i: (i, 0)),        # burst_mask
            ],
        ),
        compiler_params=pltpu.CompilerParams(
            dimension_semantics=("parallel",),
            vmem_limit_bytes=vmem_limit),
    )(xp, w1bd, b1bd, w2bd, b2bd)

    prob = prob_p.reshape(Npk, D)
    mask = mask_p.reshape(Npk, D)
    if Npk != N:
        prob, mask = prob[:N], mask[:N]
    return prob.reshape(B, T, D), mask.reshape(B, T, D)


def burst_detector_ref(x, w1, b1, w2, b2, threshold=0.6):
    """Pure-JAX reference matching the PyTorch forward."""
    h = jnp.maximum(x @ w1.T + b1, 0.0)
    prob = jax.nn.sigmoid(h @ w2.T + b2)
    mask = (prob > threshold).astype(jnp.float32)
    return prob, mask


if __name__ == "__main__":
    key = jax.random.PRNGKey(0)
    D = 32                      # input_dim
    H = D // 2
    threshold = 0.6

    k1, k2, k3, k4, kx1, kx2, kx3 = jax.random.split(key, 7)
    # Deterministic synthetic parameters (PyTorch nn.Linear layout: [out, in]).
    w1 = jax.random.normal(k1, (H, D), dtype=jnp.float32) * 0.2
    b1 = jax.random.normal(k2, (H,), dtype=jnp.float32) * 0.1
    w2 = jax.random.normal(k3, (D, H), dtype=jnp.float32) * 0.2
    b2 = jax.random.normal(k4, (D,), dtype=jnp.float32) * 0.1

    def check(x, *, block_rows=None, prob_dtype=jnp.float32,
              mask_dtype=jnp.float32, prob_atol=1e-5, prob_rtol=1e-5):
        prob, mask = burst_detector(x, w1, b1, w2, b2, threshold=threshold,
                                    block_rows=block_rows,
                                    prob_dtype=prob_dtype, mask_dtype=mask_dtype)
        jax.block_until_ready((prob, mask))
        prob_r, mask_r = burst_detector_ref(x, w1, b1, w2, b2, threshold=threshold)
        assert prob.shape == x.shape and mask.shape == x.shape
        assert jnp.allclose(prob.astype(jnp.float32), prob_r,
                            atol=prob_atol, rtol=prob_rtol), "prob mismatch"
        # The reference thresholds in sigmoid space; the kernel thresholds in
        # logit space (exact).  Ignore elements within float noise of threshold.
        safe = jnp.abs(prob_r - threshold) > 1e-4
        m = mask.astype(jnp.float32)
        assert jnp.array_equal(jnp.where(safe, m, 0.0),
                               jnp.where(safe, mask_r, 0.0)), "mask mismatch"

    # Tiny shape (single full-array block).
    check(jax.random.normal(kx1, (2, 8, D), dtype=jnp.float32))
    # Larger ragged row count: generation-aware default tiles, partial tail.
    check(jax.random.normal(kx2, (3, 400, D), dtype=jnp.float32))
    # Forced multi-step grid with a partial last block.
    check(jax.random.normal(kx2, (3, 400, D), dtype=jnp.float32), block_rows=64)
    # Row count not divisible by the lane-dense pack (tiny conditional pad).
    check(jax.random.normal(kx3, (1, 5, D), dtype=jnp.float32))
    # Narrow output dtypes (HBM byte-saving path), full-array block.
    check(jax.random.normal(kx1, (2, 64, D), dtype=jnp.float32), block_rows=32,
          prob_dtype=jnp.bfloat16, mask_dtype=jnp.int8,
          prob_atol=8e-3, prob_rtol=2e-2)

    print("KERNEL_OK")
</pallas_src>

<mosaic_0001>
module attributes {stable_mosaic.version = 11 : i64} {
  func.func @_burst_kernel(%arg0: i32, %arg1: memref<4x128xf32, #tpu.memory_space<vmem>>, %arg2: memref<128x64xf32, #tpu.memory_space<vmem>>, %arg3: memref<1x64xf32, #tpu.memory_space<vmem>>, %arg4: memref<64x128xf32, #tpu.memory_space<vmem>>, %arg5: memref<1x128xf32, #tpu.memory_space<vmem>>, %arg6: memref<4x128xf32, #tpu.memory_space<vmem>>, %arg7: memref<4x128xf32, #tpu.memory_space<vmem>>) attributes {dimension_semantics = [#tpu.dimension_semantics<parallel>], iteration_bounds = array<i64: 1>, scalar_prefetch = 0 : i64, scratch_operands = 0 : i64, tpu.core_type = #tpu.core_type<tc>, window_params = [{transform_indices = @transform_0, window_bounds = array<i64: 4, 128>}, {pipeline_mode = #tpu.pipeline_mode<synchronous>, transform_indices = @transform_1, window_bounds = array<i64: 128, 64>}, {pipeline_mode = #tpu.pipeline_mode<synchronous>, transform_indices = @transform_2, window_bounds = array<i64: 1, 64>}, {pipeline_mode = #tpu.pipeline_mode<synchronous>, transform_indices = @transform_3, window_bounds = array<i64: 64, 128>}, {pipeline_mode = #tpu.pipeline_mode<synchronous>, transform_indices = @transform_4, window_bounds = array<i64: 1, 128>}, {transform_indices = @transform_5, window_bounds = array<i64: 4, 128>}, {transform_indices = @transform_6, window_bounds = array<i64: 4, 128>}]} {
    %c0 = arith.constant 0 : index
    %c0_0 = arith.constant 0 : index
    %0 = vector.load %arg1[%c0, %c0_0] : memref<4x128xf32, #tpu.memory_space<vmem>>, vector<4x128xf32>
    %c0_1 = arith.constant 0 : index
    %c0_2 = arith.constant 0 : index
    %1 = vector.load %arg2[%c0_1, %c0_2] : memref<128x64xf32, #tpu.memory_space<vmem>>, vector<128x64xf32>
    %cst = arith.constant dense<0.000000e+00> : vector<4x64xf32>
    %2 = tpu.matmul %0, %1, %cst {dimension_numbers = #tpu.dot_dimension_numbers<[1], [0], [0], [1], [0, 0, 1, 1], [], []>} : vector<4x128xf32>, vector<128x64xf32>, vector<4x64xf32> -> vector<4x64xf32>
    %c0_3 = arith.constant 0 : index
    %c0_4 = arith.constant 0 : index
    %3 = vector.load %arg3[%c0_3, %c0_4] : memref<1x64xf32, #tpu.memory_space<vmem>>, vector<1x64xf32>
    %4 = vector.broadcast %3 : vector<1x64xf32> to vector<4x64xf32>
    %5 = arith.addf %2, %4 : vector<4x64xf32>
    %cst_5 = arith.constant 0.000000e+00 : f32
    %6 = vector.broadcast %cst_5 : f32 to vector<4x64xf32>
    %7 = arith.maximumf %5, %6 : vector<4x64xf32>
    %c0_6 = arith.constant 0 : index
    %c0_7 = arith.constant 0 : index
    %8 = vector.load %arg4[%c0_6, %c0_7] : memref<64x128xf32, #tpu.memory_space<vmem>>, vector<64x128xf32>
    %cst_8 = arith.constant dense<0.000000e+00> : vector<4x128xf32>
    %9 = tpu.matmul %7, %8, %cst_8 {dimension_numbers = #tpu.dot_dimension_numbers<[1], [0], [0], [1], [0, 0, 1, 1], [], []>} : vector<4x64xf32>, vector<64x128xf32>, vector<4x128xf32> -> vector<4x128xf32>
    %c0_9 = arith.constant 0 : index
    %c0_10 = arith.constant 0 : index
    %10 = vector.load %arg5[%c0_9, %c0_10] : memref<1x128xf32, #tpu.memory_space<vmem>>, vector<1x128xf32>
    %11 = vector.broadcast %10 : vector<1x128xf32> to vector<4x128xf32>
    %12 = arith.addf %9, %11 : vector<4x128xf32>
    %13 = arith.negf %12 : vector<4x128xf32>
    %14 = math.exp %13 : vector<4x128xf32>
    %cst_11 = arith.constant 1.000000e+00 : f32
    %15 = vector.broadcast %cst_11 : f32 to vector<4x128xf32>
    %16 = arith.addf %15, %14 : vector<4x128xf32>
    %17 = arith.divf %15, %16 : vector<4x128xf32>
    %c0_12 = arith.constant 0 : index
    %c0_13 = arith.constant 0 : index
    %18 = vector.load %arg6[%c0_12, %c0_13] : memref<4x128xf32, #tpu.memory_space<vmem>>, vector<4x128xf32>
    tpu.vector_store %arg6[%c0_12, %c0_13], %17 {strides = array<i32>} : memref<4x128xf32, #tpu.memory_space<vmem>>, vector<4x128xf32>,
    %cst_14 = arith.constant 0.405465096 : f32
    %19 = vector.broadcast %cst_14 : f32 to vector<4x128xf32>
    %20 = arith.cmpf ogt, %12, %19 : vector<4x128xf32>
    %21 = arith.extui %20 : vector<4x128xi1> to vector<4x128xi32>
    %22 = arith.sitofp %21 : vector<4x128xi32> to vector<4x128xf32>
    %c0_15 = arith.constant 0 : index
    %c0_16 = arith.constant 0 : index
    %23 = vector.load %arg7[%c0_15, %c0_16] : memref<4x128xf32, #tpu.memory_space<vmem>>, vector<4x128xf32>
    tpu.vector_store %arg7[%c0_15, %c0_16], %22 {strides = array<i32>} : memref<4x128xf32, #tpu.memory_space<vmem>>, vector<4x128xf32>,
    return
  }
  func.func @transform_0(%arg0: i32) -> (i32, i32) {
    %c0_i32 = arith.constant 0 : i32
    %c0_i32_0 = arith.constant 0 : i32
    return %arg0, %c0_i32 : i32, i32
  }
  func.func @transform_1(%arg0: i32) -> (i32, i32) {
    %c0_i32 = arith.constant 0 : i32
    %c0_i32_0 = arith.constant 0 : i32
    %c0_i32_1 = arith.constant 0 : i32
    return %c0_i32, %c0_i32_0 : i32, i32
  }
  func.func @transform_2(%arg0: i32) -> (i32, i32) {
    %c0_i32 = arith.constant 0 : i32
    %c0_i32_0 = arith.constant 0 : i32
    %c0_i32_1 = arith.constant 0 : i32
    return %c0_i32, %c0_i32_0 : i32, i32
  }
  func.func @transform_3(%arg0: i32) -> (i32, i32) {
    %c0_i32 = arith.constant 0 : i32
    %c0_i32_0 = arith.constant 0 : i32
    %c0_i32_1 = arith.constant 0 : i32
    return %c0_i32, %c0_i32_0 : i32, i32
  }
  func.func @transform_4(%arg0: i32) -> (i32, i32) {
    %c0_i32 = arith.constant 0 : i32
    %c0_i32_0 = arith.constant 0 : i32
    %c0_i32_1 = arith.constant 0 : i32
    return %c0_i32, %c0_i32_0 : i32, i32
  }
  func.func @transform_5(%arg0: i32) -> (i32, i32) {
    %c0_i32 = arith.constant 0 : i32
    %c0_i32_0 = arith.constant 0 : i32
    return %arg0, %c0_i32 : i32, i32
  }
  func.func @transform_6(%arg0: i32) -> (i32, i32) {
    %c0_i32 = arith.constant 0 : i32
    %c0_i32_0 = arith.constant 0 : i32
    return %arg0, %c0_i32 : i32, i32
  }
}

</mosaic_0001>

<bundles_post_ra>
// kernel: tpu_custom_call.1
= control target key start
LH: loop header
LB: loop body
LE: loop exit
PB: predicated region body
PF: predicated region fallthrough
CT: control target
= control target key end

     0   :  { %12 = vsyncpa [#allocation3], 0  ;;  %v425_v3 = vmov 0.0|0.0   ;;  %vm426_vm0 = vmmov 0   ;;  %v427_v6 = vmov 0.0   ;;  %s573_s0 = inlined_call_operand.vmem [shape: f32[4,128], index: 0, kind: input, shape index: {}]   ;;  %s574_s1 = inlined_call_operand.vmem [shape: f32[128,64], index: 1, kind: input, shape index: {}]   ;;  %s575_s2 = inlined_call_operand.vmem [shape: f32[1,64], index: 2, kind: input, shape index: {}]   ;;  %s576_s3 = inlined_call_operand.vmem [shape: f32[64,128], index: 3, kind: input, shape index: {}]   ;;  %s577_s4 = inlined_call_operand.vmem [shape: f32[1,128], index: 4, kind: input, shape index: {}]   ;;  %s578_s5 = inlined_call_operand.hbm [shape: f32[4,128], index: 5, kind: output, shape index: {0}]   ;;  %s579_s6 = inlined_call_operand.hbm [shape: f32[4,128], index: 6, kind: output, shape index: {1}]  }
   0x1   :  { %v25_v0 = vld [vmem:[%s574_s1] sm:$0xff]  ;;  %v26_v1 = vld [vmem:[%s574_s1 + $0x8] sm:$0xff]  ;;  %v27_v2 = vld [vmem:[%s574_s1 + $0x10] sm:$0xff]  ;;  %332 = vmatprep.subr.bf16.mxu0 %v425_v3  ;;  %310 = vmatprep.mubr.msk.f32.mxu0 %vm426_vm0, %v427_v6 }
   0x2   :  { %v333_v4 = vpack.c.bf16 %v26_v1, %v25_v0  ;;  %v28_v5 = vld [vmem:[%s574_s1 + $0x18] sm:$0xff]  ;;  %356 = vmatprep.subr.bf16.mxu1 %v425_v3  ;;  %329 = vmatprep.mubr.msk.f32.mxu1 %vm426_vm0, %v427_v6  ;;  %v29_v8 = vld [vmem:[%s574_s1 + $0x20] sm:$0xff]  ;;  %v30_v9 = vld [vmem:[%s574_s1 + $0x28] sm:$0xff] }
   0x3   :  { %v336_v7 = vpack.c.bf16 %v28_v5, %v27_v2  ;;  %v119_v10 = vld [vmem:[%s576_s3] sm:$0xff]  ;;  %v120_v11 = vld [vmem:[%s576_s3 + $0x8] sm:$0xff]  ;;  %v121_v12 = vld [vmem:[%s576_s3 + $0x10] sm:$0xff]  ;;  %v339_v14 = vpack.c.bf16 %v30_v9, %v29_v8 }
   0x4   :  { %334 = vmatpush3.bf16.msra.mxu0 %v333_v4  ;;  %v122_v13 = vld [vmem:[%s576_s3 + $0x18] sm:$0xff]  ;;  %v357_v15 = vpack.c.bf16 %v120_v11, %v119_v10  ;;  %v31_v16 = vld [vmem:[%s574_s1 + $0x30] sm:$0xff] }
   0x5   :  { %335 = vmatprep.subr.bf16.mxu0 %v425_v3  ;;  %v32_v17 = vld [vmem:[%s574_s1 + $0x38] sm:$0xff] }
   0x8   :  { %337 = vmatpush3.bf16.msra.mxu0 %v336_v7 }
   0x9   :  { %338 = vmatprep.subr.bf16.mxu0 %v425_v3 }
   0xa   :  { %13 = vsyncpa [#allocation5], 0  ;;  %358 = vmatpush3.bf16.msra.mxu1 %v357_v15  ;;  %v360_v18 = vpack.c.bf16 %v122_v13, %v121_v12  ;;  %v123_v19 = vld [vmem:[%s576_s3 + $0x20] sm:$0xff]  ;;  %v124_v20 = vld [vmem:[%s576_s3 + $0x28] sm:$0xff]  ;;  %v342_v21 = vpack.c.bf16 %v32_v17, %v31_v16  ;;  %vm134_vm1 = vcmask 523264   ;;  %s428_s25 = smov [#allocation4]  }
   0xb   :  { %359 = vmatprep.subr.bf16.mxu1 %v425_v3  ;;  %v33_v22 = vld [vmem:[%s574_s1 + $0x40] sm:$0xff]  ;;  %v34_v23 = vld [vmem:[%s574_s1 + $0x48] sm:$0xff]  ;;  %v363_v24 = vpack.c.bf16 %v124_v20, %v123_v19  ;;  %v35_v26 = vld [vmem:[%s574_s1 + $0x50] sm:$0xff]  ;;  %s235_s26 = sshll.u32 %s428_s25, 4  ;;  %s236_s26 = int_to_ptr.vmem [resolvable:$true] %s235_s26 }
   0xc   :  { %340 = vmatpush3.bf16.msra.mxu0 %v339_v14  ;;  %v345_v25 = vpack.c.bf16 %v34_v23, %v33_v22  ;;  %v36_v27 = vld [vmem:[%s574_s1 + $0x58] sm:$0xff]  ;;  %v37_v29 = vld [vmem:[%s574_s1 + $0x60] sm:$0xff]  ;;  %v38_v30 = vld [vmem:[%s574_s1 + $0x68] sm:$0xff]  ;;  %p382_p1 = scmp.lt.s32.totalorder %s236_s26, %s236_s26 }
   0xd   :  { %341 = vmatprep.subr.bf16.mxu0 %v425_v3  ;;  %v348_v28 = vpack.c.bf16 %v36_v27, %v35_v26  ;;  %v351_v31 = vpack.c.bf16 %v38_v30, %v37_v29  ;;  %v39_v32 = vld [vmem:[%s574_s1 + $0x70] sm:$0xff]  ;;  %v40_v33 = vld [vmem:[%s574_s1 + $0x78] sm:$0xff]  ;;  %v24_v35 = vld [vmem:[%s573_s0] sm:$0xf] }
   0xe   :  { %361 = vmatpush3.bf16.msra.mxu1 %v360_v18  ;;  %v354_v34 = vpack.c.bf16 %v40_v33, %v39_v32  ;;  %v125_v36 = vld [vmem:[%s576_s3 + $0x30] sm:$0xff]  ;;  %v126_v37 = vld [vmem:[%s576_s3 + $0x38] sm:$0xff]  ;;  %v247_v39 = vld [vmem:[%s575_s2] ss:$0 sm:$0xff]  ;;  %s377_s2 = scalar_lea.vmem %s236_s26, 64 }
   0xf   :  { %362 = vmatprep.subr.bf16.mxu1 %v425_v3  ;;  %v366_v38 = vpack.c.bf16 %v126_v37, %v125_v36  ;;  %v248_v44 = vld [vmem:[%s577_s4] ss:$0 sm:$0xff]  ;;  %p378_p0 = scmp.ne.s32.totalorder %s236_s26, %s377_s2  ;;  %p383_p2 = scmp.lt.s32.totalorder %s377_s2, %s377_s2 }
  0x10   :  { %343 = vmatpush3.bf16.msra.mxu0 %v342_v21 }
  0x11   :  { %344 = vmatprep.subr.bf16.mxu0 %v425_v3  ;;  %p384_p3 = por %p383_p2, %p382_p1 }
  0x12   :  { %364 = vmatpush3.bf16.msra.mxu1 %v363_v24 }
  0x13   :  { %365 = vmatprep.subr.bf16.mxu1 %v425_v3  ;;  %p385_p4 = pnand %p384_p3, %p378_p0 }
  0x14   :  { %346 = vmatpush3.bf16.msra.mxu0 %v345_v25 }
  0x15   :  { %347 = vmatprep.subr.bf16.mxu0 %v425_v3 }
  0x16   :  { %367 = vmatpush3.bf16.msra.mxu1 %v366_v38 }
  0x18   :  { %349 = vmatpush3.bf16.msra.mxu0 %v348_v28 }
  0x19   :  { %350 = vmatprep.subr.bf16.mxu0 %v425_v3 }
  0x1c   :  { %352 = vmatpush3.bf16.msra.mxu0 %v351_v31 }
  0x1d   :  { %353 = vmatprep.subr.bf16.mxu0 %v425_v3 }
  0x20   :  { %355 = vmatpush3.bf16.msra.mxu0 %v354_v34 }
  0x23   :  { %311 = vmatmul.mubr.f32.vlgmr.msra.gmra.mrb[0].mxu0 %v24_v35 }
  0xf6   :  { %v114_v40 = vpop.f32.mrb[0].mxu0 }
  0xf7   :  { %v115_v41 = vadd.f32 %v247_v39, %v114_v40  ;;  %v312_v42 = vpop.f32.mrb[1].mxu0 }
  0xf9   :  { %v118_v43 = vmax.f32 %v115_v41, 0.0 }
  0xfb   :  { %330 = vmatmul.mubr.msk.f32.vlgmr.msra.gmra.mrb[0].mxu1 %vm134_vm1, %v118_v43 }
 0x1ce   :  { %v204_v45 = vpop.f32.mrb[0].mxu1 }
 0x1cf   :  { %v205_v46 = vadd.f32 %v248_v44, %v204_v45  ;;  %v331_v47 = vpop.f32.mrb[1].mxu1 }
 0x1d1   :  { %v250_v48 = vmul.f32 -1.442695, %v205_v46  ;;  %vm215_vm2 = vcmp.gt.f32.partialorder %v205_v46, 0.4054651 }
 0x1d2   :  { %v251_v49 = vsel %vm215_vm2, 1.0, %v427_v6 }
 0x1d3   :  { %373 = vpow2.f32 %v250_v48  ;;  %218 = vst [vmem:[#allocation4] sm:$0xf] %v251_v49 }
 0x1d4   :  { %388 = shalt.err (!%p385_p4)
}
 0x1d5   :  { %s389_s27 = scalar_lea.hbm %s579_s6, 64 }
 0x1d6   :  { %p390_p5 = scmp.ne.s32.totalorder %s579_s6, %s389_s27  ;;  %p393_p6 = scmp.lt.u32.totalorder %s389_s27, %s579_s6 }
 0x1d8   :  { %p395_p7 = pnand %p393_p6, %p390_p5 }
 0x1da   :  { %398 = shalt.err (!%p395_p7)
}
 0x1db   :  { %238 = dma.vmem_to_hbm [thread:$0]  %s236_s26, 64, %s579_s6, [#allocation5]  }
 0x1dc   :  { %s429_s10 = smov [#allocation2]  }
 0x1dd   :  { %v374_v50 = vpop.eup %373  ;;  %s225_s11 = sshll.u32 %s429_s10, 4  ;;  %s226_s11 = int_to_ptr.vmem [resolvable:$true] %s225_s11 }
 0x1de   :  { %v211_v51 = vadd.f32 1.0, %v374_v50  ;;  %s399_s12 = scalar_lea.vmem %s226_s11, 64  ;;  %p404_p9 = scmp.lt.s32.totalorder %s226_s11, %s226_s11 }
 0x1df   :  { %p400_p8 = scmp.ne.s32.totalorder %s226_s11, %s399_s12  ;;  %p405_p10 = scmp.lt.s32.totalorder %s399_s12, %s399_s12 }
 0x1e0   :  { %375 = vrcp.f32 %v211_v51 }
 0x1e1   :  { %p406_p11 = por %p405_p10, %p404_p9 }
 0x1e3   :  { %p407_p12 = pnand %p406_p11, %p400_p8 }
 0x1ea   :  { %v376_v52 = vpop.eup %375 }
 0x1eb   :  { %214 = vst [vmem:[#allocation2] sm:$0xf] %v376_v52 }
 0x1ec   :  { %410 = shalt.err (!%p407_p12)
}
 0x1ed   :  { %s411_s15 = scalar_lea.hbm %s578_s5, 64 }
 0x1ee   :  { %p412_p13 = scmp.ne.s32.totalorder %s578_s5, %s411_s15  ;;  %p415_p0 = scmp.lt.u32.totalorder %s411_s15, %s578_s5 }
 0x1f0   :  { %p417_p1 = pnand %p415_p0, %p412_p13 }
 0x1f2   :  { %420 = shalt.err (!%p417_p1)
}
 0x1f3   :  { %228 = dma.vmem_to_hbm [thread:$0]  %s226_s11, 64, %s578_s5, [#allocation3]  }
 0x1f4   :  { %421 = dma.done.wait [#allocation3], 64  }
 0x1f5   :  { %422 = vsyncadd [#allocation3], 4294967232 }
 0x1f6   :  { %423 = dma.done.wait [#allocation5], 64  }
 0x1f7   :  { %424 = vsyncadd [#allocation5], 4294967232 }
 0x1f8   :  { %245 = vsyncpa [#allocation3], 1 }
 0x1f9   :  { %246 = vsyncpa [#allocation5], 1 }

</bundles_post_ra>
